<compile_context>
chip_gen: v7x
topology: tpu7x:2x2x1
jax: 0.10.0
libtpu: 0.0.40
codegen_flags: <defaults>
</compile_context>

<pallas_src>
import functools
import numpy as np
import jax
import jax.numpy as jnp
from jax import lax
from jax.experimental import pallas as pl
from jax.experimental.pallas import tpu as pltpu


_MAX_UNROLL_K = 128          # fully unroll the selection loop up to this k
_LANE = 128                  # TPU lane width (lane-dense output padding)
_VMEM_TILE_BUDGET = 12 * 1024 * 1024   # per-tile pipelined footprint target (bytes)


def _round_up(x, m):
    return ((x + m - 1) // m) * m


def _choose_tile_r(R, C, k_pad, budget_bytes=_VMEM_TILE_BUDGET):
    """Largest row tile (multiple of 8, dividing R) whose double-buffered
    inputs + outputs fit the VMEM budget."""
    # per tile row: 2 inputs x 2 buffers x C x 4B  +  2 outputs x 2 buffers x k_pad x 4B
    per_row = 4 * (2 * 2 * C + 2 * 2 * k_pad + 2)
    for t in (512, 256, 128, 64, 32, 16, 8):
        if R % t == 0 and t * per_row <= budget_bytes:
            return t
    return R  # R not a multiple of 8 (small) -> single full-height block


def _adap_topk_kernel(dist_ref, tgt_ref, rowsum_ref, idx_ref, val_ref, *, k):
    """One row tile.

    dist_ref, tgt_ref : (TILE_R, C)  f32
    rowsum_ref        : (TILE_R, 1)  f32   per-row sum(d*t) (reduced in wrapper)
    idx_ref, val_ref  : (TILE_R, K_PAD)    columns [0, k) = k smallest per row
                        (ascending, lowest column index on ties); [k, K_PAD) = 0.
    """
    d = dist_ref[...]
    t = tgt_ref[...]
    tile_r, C = d.shape

    # gt_cost partial on the MXU so it does not compete with the XLU argmin
    # reductions of the selection loop.
    ones_c = jnp.ones((C, 1), jnp.float32)
    rowsum_ref[...] = jnp.dot(d * t, ones_c, preferred_element_type=jnp.float32)

    # Deterministic lane padding (single dense store per output, then the
    # selection loop overwrites columns [0, k)).
    idx_ref[...] = jnp.zeros_like(idx_ref)
    val_ref[...] = jnp.zeros_like(val_ref)

    col = lax.broadcasted_iota(jnp.int32, (tile_r, C), 1)
    big_col = jnp.int32(C)
    inf = jnp.float32(jnp.inf)

    if k <= _MAX_UNROLL_K:
        # k is a static Python int -> fully unrolled loop.  Each step stores its
        # (index, value) column directly to the output refs at a STATIC column,
        # so no (TILE_R, k) accumulators live across iterations.
        w = d
        for j in range(k):
            m = jnp.min(w, axis=1, keepdims=True)                        # (TILE_R, 1)
            amin = jnp.min(jnp.where(w == m, col, big_col), axis=1,
                           keepdims=True)                                # (TILE_R, 1)
            idx_ref[:, j:j + 1] = amin
            val_ref[:, j:j + 1] = m
            w = jnp.where(col == amin, inf, w)
    else:
        # Large-k fallback: rolled loop with carried accumulators + one dense
        # store at the end (keeps trace/compile size bounded).
        slot = lax.broadcasted_iota(jnp.int32, (tile_r, k), 1)

        def body(j, carry):
            w, iacc, vacc = carry
            m = jnp.min(w, axis=1, keepdims=True)
            amin = jnp.min(jnp.where(w == m, col, big_col), axis=1, keepdims=True)
            sel = slot == j
            iacc = jnp.where(sel, amin, iacc)
            vacc = jnp.where(sel, m, vacc)
            w = jnp.where(col == amin, inf, w)
            return w, iacc, vacc

        init = (d,
                jnp.zeros((tile_r, k), jnp.int32),
                jnp.zeros((tile_r, k), jnp.float32))
        _, iacc, vacc = lax.fori_loop(0, k, body, init)
        idx_ref[:, :k] = iacc
        val_ref[:, :k] = vacc


def adap_topk_graph(distance_matrix, target, *, step):
    R, C = distance_matrix.shape
    # k = min(row_size, 10 + step * int(row_size / 10)); additionally clamp to C so
    # column indices stay in range for non-square matrices (R > C).
    k = min(R, 10 + step * (R // 10))
    k = min(k, C)

    k_pad = _round_up(k, _LANE)           # lane-dense output last dim
    tile_r = _choose_tile_r(R, C, k_pad)
    assert R % tile_r == 0
    num_tiles = R // tile_r

    kernel = functools.partial(_adap_topk_kernel, k=k)
    row_sums, idx_pad, val_pad = pl.pallas_call(
        kernel,
        grid=(num_tiles,),
        in_specs=[pl.BlockSpec((tile_r, C), lambda i: (i, 0)),
                  pl.BlockSpec((tile_r, C), lambda i: (i, 0))],
        out_specs=(pl.BlockSpec((tile_r, 1), lambda i: (i, 0)),
                   pl.BlockSpec((tile_r, k_pad), lambda i: (i, 0)),
                   pl.BlockSpec((tile_r, k_pad), lambda i: (i, 0))),
        out_shape=(jax.ShapeDtypeStruct((R, 1), jnp.float32),
                   jax.ShapeDtypeStruct((R, k_pad), jnp.int32),
                   jax.ShapeDtypeStruct((R, k_pad), jnp.float32)),
        compiler_params=pltpu.CompilerParams(
            dimension_semantics=("parallel",),
            vmem_limit_bytes=32 * 1024 * 1024),
    )(distance_matrix, target)

    gt_cost = jnp.sum(row_sums)              # finish the reduction of the partials
    idx_knn = idx_pad[:, :k]                 # (R, k) int32
    knn_vals = val_pad[:, :k]                # (R, k) f32 = dist[row, idx_knn]

    # ---- graph bookkeeping (glue); static pieces built in numpy at trace time ----
    rows_np = np.repeat(np.arange(R, dtype=np.int32), k)       # (R*k,) fully static
    rows = jnp.asarray(rows_np)
    cols = idx_knn.reshape(-1) + jnp.int32(R)                   # (R*k,)

    # [row, col+R, col+R, row] per kNN edge -> (2, 2*R*k): same result as the
    # cat / view / permute chain in the PyTorch module, in two ops.
    edge_index = jnp.stack([rows, cols, cols, rows], axis=1).reshape(-1, 2).T

    vals = knn_vals.reshape(-1)
    edge_attr = jnp.stack([vals, vals], axis=1).reshape(-1, 1)  # (2*R*k, 1)

    idx_row = rows.reshape(-1, 1)
    idx_knn_col = idx_knn.reshape(-1, 1)

    # NOTE: PyTorch uses int64 edge indices; int32 is used here (TPU-friendly).
    # TODO(synk): torch_geometric.data.Data has no JAX equivalent; returning a dict.
    data = {
        "x": jnp.zeros((R + C, 8), jnp.float32),
        "edge_index": edge_index,
        "edge_attr": edge_attr,
        "y": target.reshape(-1, 1),
        "kwargs": [R, k, idx_row, idx_knn_col, gt_cost, edge_attr.shape[0]],
        "cost_vec": distance_matrix.reshape(-1, 1),
    }
    return data


if __name__ == "__main__":
    step = 1                          # module "parameter" (deterministic, set in-script)
    R, C = 16, 16                     # small square cost matrix

    key = jax.random.PRNGKey(0)
    k1, k2 = jax.random.split(key)
    distance_matrix = jnp.abs(jax.random.normal(k1, (R, C), dtype=jnp.float32))
    target = (jax.random.uniform(k2, (R, C)) > 0.5).astype(jnp.float32)

    data = adap_topk_graph(distance_matrix, target, step=step)
    jax.block_until_ready(data["edge_index"])
    jax.block_until_ready(data["edge_attr"])

    # ---- correctness check against a pure-JAX / numpy reference ----
    k = min(R, 10 + step * (R // 10))
    k = min(k, C)
    ref_idx = jnp.argsort(distance_matrix, axis=1)[:, :k]
    ref_attr = jnp.take_along_axis(distance_matrix, ref_idx, axis=1)
    ref_gt = jnp.sum(distance_matrix * target)

    got_idx = data["kwargs"][3].reshape(R, k)
    got_attr = data["edge_attr"].reshape(R * k, 2)[:, 0].reshape(R, k)
    got_gt = data["kwargs"][4]

    np.testing.assert_array_equal(np.asarray(got_idx), np.asarray(ref_idx))
    np.testing.assert_allclose(np.asarray(got_attr), np.asarray(ref_attr), rtol=1e-6)
    np.testing.assert_allclose(np.asarray(got_gt), np.asarray(ref_gt), rtol=1e-5)

    # edge_index reference (mirrors the cat/view/permute chain of the PyTorch module)
    ei_ref = np.stack([np.repeat(np.arange(R), k),
                       np.asarray(ref_idx).reshape(-1) + R], axis=1)
    ei_ref = np.concatenate([ei_ref, ei_ref[:, 1:2], ei_ref[:, 0:1]], axis=1)
    ei_ref = ei_ref.reshape(-1, 2).T
    np.testing.assert_array_equal(np.asarray(data["edge_index"]), ei_ref)

    assert data["edge_index"].shape == (2, 2 * R * k)
    assert data["x"].shape == (R + C, 8)
    assert data["cost_vec"].shape == (R * C, 1)

    print("KERNEL_OK")
</pallas_src>

<mosaic_0001>
module attributes {stable_mosaic.version = 11 : i64} {
  func.func @_adap_topk_kernel(%arg0: i32, %arg1: memref<16x16xf32, #tpu.memory_space<vmem>>, %arg2: memref<16x16xf32, #tpu.memory_space<vmem>>, %arg3: memref<16x1xf32, #tpu.memory_space<vmem>>, %arg4: memref<16x128xi32, #tpu.memory_space<vmem>>, %arg5: memref<16x128xf32, #tpu.memory_space<vmem>>) attributes {dimension_semantics = [#tpu.dimension_semantics<parallel>], iteration_bounds = array<i64: 1>, scalar_prefetch = 0 : i64, scratch_operands = 0 : i64, tpu.core_type = #tpu.core_type<tc>, window_params = [{transform_indices = @transform_0, window_bounds = array<i64: 16, 16>}, {transform_indices = @transform_1, window_bounds = array<i64: 16, 16>}, {transform_indices = @transform_2, window_bounds = array<i64: 16, 1>}, {transform_indices = @transform_3, window_bounds = array<i64: 16, 128>}, {transform_indices = @transform_4, window_bounds = array<i64: 16, 128>}]} {
    %c0 = arith.constant 0 : index
    %c0_0 = arith.constant 0 : index
    %0 = vector.load %arg1[%c0, %c0_0] : memref<16x16xf32, #tpu.memory_space<vmem>>, vector<16x16xf32>
    %c0_1 = arith.constant 0 : index
    %c0_2 = arith.constant 0 : index
    %1 = vector.load %arg2[%c0_1, %c0_2] : memref<16x16xf32, #tpu.memory_space<vmem>>, vector<16x16xf32>
    %cst = arith.constant 1.000000e+00 : f32
    %2 = vector.broadcast %cst : f32 to vector<16x1xf32>
    %3 = arith.mulf %0, %1 : vector<16x16xf32>
    %cst_3 = arith.constant dense<0.000000e+00> : vector<16x1xf32>
    %4 = tpu.matmul %3, %2, %cst_3 {dimension_numbers = #tpu.dot_dimension_numbers<[1], [0], [0], [1], [0, 0, 1, 1], [], []>} : vector<16x16xf32>, vector<16x1xf32>, vector<16x1xf32> -> vector<16x1xf32>
    %c0_4 = arith.constant 0 : index
    %c0_5 = arith.constant 0 : index
    %5 = vector.load %arg3[%c0_4, %c0_5] : memref<16x1xf32, #tpu.memory_space<vmem>>, vector<16x1xf32>
    tpu.vector_store %arg3[%c0_4, %c0_5], %4 {strides = array<i32>} : memref<16x1xf32, #tpu.memory_space<vmem>>, vector<16x1xf32>,
    %c0_i32 = arith.constant 0 : i32
    %6 = vector.broadcast %c0_i32 : i32 to vector<16x128xi32>
    %c0_6 = arith.constant 0 : index
    %c0_7 = arith.constant 0 : index
    %7 = vector.load %arg4[%c0_6, %c0_7] : memref<16x128xi32, #tpu.memory_space<vmem>>, vector<16x128xi32>
    tpu.vector_store %arg4[%c0_6, %c0_7], %6 {strides = array<i32>} : memref<16x128xi32, #tpu.memory_space<vmem>>, vector<16x128xi32>,
    %cst_8 = arith.constant 0.000000e+00 : f32
    %8 = vector.broadcast %cst_8 : f32 to vector<16x128xf32>
    %c0_9 = arith.constant 0 : index
    %c0_10 = arith.constant 0 : index
    %9 = vector.load %arg5[%c0_9, %c0_10] : memref<16x128xf32, #tpu.memory_space<vmem>>, vector<16x128xf32>
    tpu.vector_store %arg5[%c0_9, %c0_10], %8 {strides = array<i32>} : memref<16x128xf32, #tpu.memory_space<vmem>>, vector<16x128xf32>,
    %10 = tpu.iota {dimensions = array<i32: 1>} : vector<16x16xi32>
    %cst_11 = arith.constant dense<0x7F800000> : vector<16xf32>
    %11 = vector.multi_reduction <minimumf>, %0, %cst_11 [1] : vector<16x16xf32> to vector<16xf32>
    %12 = vector.shape_cast %11 : vector<16xf32> to vector<16x1xf32>
    %13 = vector.broadcast %12 : vector<16x1xf32> to vector<16x16xf32>
    %14 = arith.cmpf oeq, %0, %13 : vector<16x16xf32>
    %c16_i32 = arith.constant 16 : i32
    %15 = vector.broadcast %c16_i32 : i32 to vector<16x16xi32>
    %16 = arith.select %14, %10, %15 : vector<16x16xi1>, vector<16x16xi32>
    %cst_12 = arith.constant dense<2147483647> : vector<16xi32>
    %17 = vector.multi_reduction <minsi>, %16, %cst_12 [1] : vector<16x16xi32> to vector<16xi32>
    %18 = vector.shape_cast %17 : vector<16xi32> to vector<16x1xi32>
    %c0_13 = arith.constant 0 : index
    %c0_14 = arith.constant 0 : index
    %19 = vector.load %arg4[%c0_13, %c0_14] : memref<16x128xi32, #tpu.memory_space<vmem>>, vector<16x1xi32>
    tpu.vector_store %arg4[%c0_13, %c0_14], %18 {strides = array<i32>} : memref<16x128xi32, #tpu.memory_space<vmem>>, vector<16x1xi32>,
    %c0_15 = arith.constant 0 : index
    %c0_16 = arith.constant 0 : index
    %20 = vector.load %arg5[%c0_15, %c0_16] : memref<16x128xf32, #tpu.memory_space<vmem>>, vector<16x1xf32>
    tpu.vector_store %arg5[%c0_15, %c0_16], %12 {strides = array<i32>} : memref<16x128xf32, #tpu.memory_space<vmem>>, vector<16x1xf32>,
    %21 = vector.broadcast %18 : vector<16x1xi32> to vector<16x16xi32>
    %22 = arith.cmpi eq, %10, %21 : vector<16x16xi32>
    %cst_17 = arith.constant 0x7F800000 : f32
    %23 = vector.broadcast %cst_17 : f32 to vector<16x16xf32>
    %24 = arith.select %22, %23, %0 : vector<16x16xi1>, vector<16x16xf32>
    %cst_18 = arith.constant dense<0x7F800000> : vector<16xf32>
    %25 = vector.multi_reduction <minimumf>, %24, %cst_18 [1] : vector<16x16xf32> to vector<16xf32>
    %26 = vector.shape_cast %25 : vector<16xf32> to vector<16x1xf32>
    %27 = vector.broadcast %26 : vector<16x1xf32> to vector<16x16xf32>
    %28 = arith.cmpf oeq, %24, %27 : vector<16x16xf32>
    %c16_i32_19 = arith.constant 16 : i32
    %29 = vector.broadcast %c16_i32_19 : i32 to vector<16x16xi32>
    %30 = arith.select %28, %10, %29 : vector<16x16xi1>, vector<16x16xi32>
    %cst_20 = arith.constant dense<2147483647> : vector<16xi32>
    %31 = vector.multi_reduction <minsi>, %30, %cst_20 [1] : vector<16x16xi32> to vector<16xi32>
    %32 = vector.shape_cast %31 : vector<16xi32> to vector<16x1xi32>
    %c0_21 = arith.constant 0 : index
    %c1 = arith.constant 1 : index
    %33 = vector.load %arg4[%c0_21, %c1] : memref<16x128xi32, #tpu.memory_space<vmem>>, vector<16x1xi32>
    tpu.vector_store %arg4[%c0_21, %c1], %32 {strides = array<i32>} : memref<16x128xi32, #tpu.memory_space<vmem>>, vector<16x1xi32>,
    %c0_22 = arith.constant 0 : index
    %c1_23 = arith.constant 1 : index
    %34 = vector.load %arg5[%c0_22, %c1_23] : memref<16x128xf32, #tpu.memory_space<vmem>>, vector<16x1xf32>
    tpu.vector_store %arg5[%c0_22, %c1_23], %26 {strides = array<i32>} : memref<16x128xf32, #tpu.memory_space<vmem>>, vector<16x1xf32>,
    %35 = vector.broadcast %32 : vector<16x1xi32> to vector<16x16xi32>
    %36 = arith.cmpi eq, %10, %35 : vector<16x16xi32>
    %cst_24 = arith.constant 0x7F800000 : f32
    %37 = vector.broadcast %cst_24 : f32 to vector<16x16xf32>
    %38 = arith.select %36, %37, %24 : vector<16x16xi1>, vector<16x16xf32>
    %cst_25 = arith.constant dense<0x7F800000> : vector<16xf32>
    %39 = vector.multi_reduction <minimumf>, %38, %cst_25 [1] : vector<16x16xf32> to vector<16xf32>
    %40 = vector.shape_cast %39 : vector<16xf32> to vector<16x1xf32>
    %41 = vector.broadcast %40 : vector<16x1xf32> to vector<16x16xf32>
    %42 = arith.cmpf oeq, %38, %41 : vector<16x16xf32>
    %c16_i32_26 = arith.constant 16 : i32
    %43 = vector.broadcast %c16_i32_26 : i32 to vector<16x16xi32>
    %44 = arith.select %42, %10, %43 : vector<16x16xi1>, vector<16x16xi32>
    %cst_27 = arith.constant dense<2147483647> : vector<16xi32>
    %45 = vector.multi_reduction <minsi>, %44, %cst_27 [1] : vector<16x16xi32> to vector<16xi32>
    %46 = vector.shape_cast %45 : vector<16xi32> to vector<16x1xi32>
    %c0_28 = arith.constant 0 : index
    %c2 = arith.constant 2 : index
    %47 = vector.load %arg4[%c0_28, %c2] : memref<16x128xi32, #tpu.memory_space<vmem>>, vector<16x1xi32>
    tpu.vector_store %arg4[%c0_28, %c2], %46 {strides = array<i32>} : memref<16x128xi32, #tpu.memory_space<vmem>>, vector<16x1xi32>,
    %c0_29 = arith.constant 0 : index
    %c2_30 = arith.constant 2 : index
    %48 = vector.load %arg5[%c0_29, %c2_30] : memref<16x128xf32, #tpu.memory_space<vmem>>, vector<16x1xf32>
    tpu.vector_store %arg5[%c0_29, %c2_30], %40 {strides = array<i32>} : memref<16x128xf32, #tpu.memory_space<vmem>>, vector<16x1xf32>,
    %49 = vector.broadcast %46 : vector<16x1xi32> to vector<16x16xi32>
    %50 = arith.cmpi eq, %10, %49 : vector<16x16xi32>
    %cst_31 = arith.constant 0x7F800000 : f32
    %51 = vector.broadcast %cst_31 : f32 to vector<16x16xf32>
    %52 = arith.select %50, %51, %38 : vector<16x16xi1>, vector<16x16xf32>
    %cst_32 = arith.constant dense<0x7F800000> : vector<16xf32>
    %53 = vector.multi_reduction <minimumf>, %52, %cst_32 [1] : vector<16x16xf32> to vector<16xf32>
    %54 = vector.shape_cast %53 : vector<16xf32> to vector<16x1xf32>
    %55 = vector.broadcast %54 : vector<16x1xf32> to vector<16x16xf32>
    %56 = arith.cmpf oeq, %52, %55 : vector<16x16xf32>
    %c16_i32_33 = arith.constant 16 : i32
    %57 = vector.broadcast %c16_i32_33 : i32 to vector<16x16xi32>
    %58 = arith.select %56, %10, %57 : vector<16x16xi1>, vector<16x16xi32>
    %cst_34 = arith.constant dense<2147483647> : vector<16xi32>
    %59 = vector.multi_reduction <minsi>, %58, %cst_34 [1] : vector<16x16xi32> to vector<16xi32>
    %60 = vector.shape_cast %59 : vector<16xi32> to vector<16x1xi32>
    %c0_35 = arith.constant 0 : index
    %c3 = arith.constant 3 : index
    %61 = vector.load %arg4[%c0_35, %c3] : memref<16x128xi32, #tpu.memory_space<vmem>>, vector<16x1xi32>
    tpu.vector_store %arg4[%c0_35, %c3], %60 {strides = array<i32>} : memref<16x128xi32, #tpu.memory_space<vmem>>, vector<16x1xi32>,
    %c0_36 = arith.constant 0 : index
    %c3_37 = arith.constant 3 : index
    %62 = vector.load %arg5[%c0_36, %c3_37] : memref<16x128xf32, #tpu.memory_space<vmem>>, vector<16x1xf32>
    tpu.vector_store %arg5[%c0_36, %c3_37], %54 {strides = array<i32>} : memref<16x128xf32, #tpu.memory_space<vmem>>, vector<16x1xf32>,
    %63 = vector.broadcast %60 : vector<16x1xi32> to vector<16x16xi32>
    %64 = arith.cmpi eq, %10, %63 : vector<16x16xi32>
    %cst_38 = arith.constant 0x7F800000 : f32
    %65 = vector.broadcast %cst_38 : f32 to vector<16x16xf32>
    %66 = arith.select %64, %65, %52 : vector<16x16xi1>, vector<16x16xf32>
    %cst_39 = arith.constant dense<0x7F800000> : vector<16xf32>
    %67 = vector.multi_reduction <minimumf>, %66, %cst_39 [1] : vector<16x16xf32> to vector<16xf32>
    %68 = vector.shape_cast %67 : vector<16xf32> to vector<16x1xf32>
    %69 = vector.broadcast %68 : vector<16x1xf32> to vector<16x16xf32>
    %70 = arith.cmpf oeq, %66, %69 : vector<16x16xf32>
    %c16_i32_40 = arith.constant 16 : i32
    %71 = vector.broadcast %c16_i32_40 : i32 to vector<16x16xi32>
    %72 = arith.select %70, %10, %71 : vector<16x16xi1>, vector<16x16xi32>
    %cst_41 = arith.constant dense<2147483647> : vector<16xi32>
    %73 = vector.multi_reduction <minsi>, %72, %cst_41 [1] : vector<16x16xi32> to vector<16xi32>
    %74 = vector.shape_cast %73 : vector<16xi32> to vector<16x1xi32>
    %c0_42 = arith.constant 0 : index
    %c4 = arith.constant 4 : index
    %75 = vector.load %arg4[%c0_42, %c4] : memref<16x128xi32, #tpu.memory_space<vmem>>, vector<16x1xi32>
    tpu.vector_store %arg4[%c0_42, %c4], %74 {strides = array<i32>} : memref<16x128xi32, #tpu.memory_space<vmem>>, vector<16x1xi32>,
    %c0_43 = arith.constant 0 : index
    %c4_44 = arith.constant 4 : index
    %76 = vector.load %arg5[%c0_43, %c4_44] : memref<16x128xf32, #tpu.memory_space<vmem>>, vector<16x1xf32>
    tpu.vector_store %arg5[%c0_43, %c4_44], %68 {strides = array<i32>} : memref<16x128xf32, #tpu.memory_space<vmem>>, vector<16x1xf32>,
    %77 = vector.broadcast %74 : vector<16x1xi32> to vector<16x16xi32>
    %78 = arith.cmpi eq, %10, %77 : vector<16x16xi32>
    %cst_45 = arith.constant 0x7F800000 : f32
    %79 = vector.broadcast %cst_45 : f32 to vector<16x16xf32>
    %80 = arith.select %78, %79, %66 : vector<16x16xi1>, vector<16x16xf32>
    %cst_46 = arith.constant dense<0x7F800000> : vector<16xf32>
    %81 = vector.multi_reduction <minimumf>, %80, %cst_46 [1] : vector<16x16xf32> to vector<16xf32>
    %82 = vector.shape_cast %81 : vector<16xf32> to vector<16x1xf32>
    %83 = vector.broadcast %82 : vector<16x1xf32> to vector<16x16xf32>
    %84 = arith.cmpf oeq, %80, %83 : vector<16x16xf32>
    %c16_i32_47 = arith.constant 16 : i32
    %85 = vector.broadcast %c16_i32_47 : i32 to vector<16x16xi32>
    %86 = arith.select %84, %10, %85 : vector<16x16xi1>, vector<16x16xi32>
    %cst_48 = arith.constant dense<2147483647> : vector<16xi32>
    %87 = vector.multi_reduction <minsi>, %86, %cst_48 [1] : vector<16x16xi32> to vector<16xi32>
    %88 = vector.shape_cast %87 : vector<16xi32> to vector<16x1xi32>
    %c0_49 = arith.constant 0 : index
    %c5 = arith.constant 5 : index
    %89 = vector.load %arg4[%c0_49, %c5] : memref<16x128xi32, #tpu.memory_space<vmem>>, vector<16x1xi32>
    tpu.vector_store %arg4[%c0_49, %c5], %88 {strides = array<i32>} : memref<16x128xi32, #tpu.memory_space<vmem>>, vector<16x1xi32>,
    %c0_50 = arith.constant 0 : index
    %c5_51 = arith.constant 5 : index
    %90 = vector.load %arg5[%c0_50, %c5_51] : memref<16x128xf32, #tpu.memory_space<vmem>>, vector<16x1xf32>
    tpu.vector_store %arg5[%c0_50, %c5_51], %82 {strides = array<i32>} : memref<16x128xf32, #tpu.memory_space<vmem>>, vector<16x1xf32>,
    %91 = vector.broadcast %88 : vector<16x1xi32> to vector<16x16xi32>
    %92 = arith.cmpi eq, %10, %91 : vector<16x16xi32>
    %cst_52 = arith.constant 0x7F800000 : f32
    %93 = vector.broadcast %cst_52 : f32 to vector<16x16xf32>
    %94 = arith.select %92, %93, %80 : vector<16x16xi1>, vector<16x16xf32>
    %cst_53 = arith.constant dense<0x7F800000> : vector<16xf32>
    %95 = vector.multi_reduction <minimumf>, %94, %cst_53 [1] : vector<16x16xf32> to vector<16xf32>
    %96 = vector.shape_cast %95 : vector<16xf32> to vector<16x1xf32>
    %97 = vector.broadcast %96 : vector<16x1xf32> to vector<16x16xf32>
    %98 = arith.cmpf oeq, %94, %97 : vector<16x16xf32>
    %c16_i32_54 = arith.constant 16 : i32
    %99 = vector.broadcast %c16_i32_54 : i32 to vector<16x16xi32>
    %100 = arith.select %98, %10, %99 : vector<16x16xi1>, vector<16x16xi32>
    %cst_55 = arith.constant dense<2147483647> : vector<16xi32>
    %101 = vector.multi_reduction <minsi>, %100, %cst_55 [1] : vector<16x16xi32> to vector<16xi32>
    %102 = vector.shape_cast %101 : vector<16xi32> to vector<16x1xi32>
    %c0_56 = arith.constant 0 : index
    %c6 = arith.constant 6 : index
    %103 = vector.load %arg4[%c0_56, %c6] : memref<16x128xi32, #tpu.memory_space<vmem>>, vector<16x1xi32>
    tpu.vector_store %arg4[%c0_56, %c6], %102 {strides = array<i32>} : memref<16x128xi32, #tpu.memory_space<vmem>>, vector<16x1xi32>,
    %c0_57 = arith.constant 0 : index
    %c6_58 = arith.constant 6 : index
    %104 = vector.load %arg5[%c0_57, %c6_58] : memref<16x128xf32, #tpu.memory_space<vmem>>, vector<16x1xf32>
    tpu.vector_store %arg5[%c0_57, %c6_58], %96 {strides = array<i32>} : memref<16x128xf32, #tpu.memory_space<vmem>>, vector<16x1xf32>,
    %105 = vector.broadcast %102 : vector<16x1xi32> to vector<16x16xi32>
    %106 = arith.cmpi eq, %10, %105 : vector<16x16xi32>
    %cst_59 = arith.constant 0x7F800000 : f32
    %107 = vector.broadcast %cst_59 : f32 to vector<16x16xf32>
    %108 = arith.select %106, %107, %94 : vector<16x16xi1>, vector<16x16xf32>
    %cst_60 = arith.constant dense<0x7F800000> : vector<16xf32>
    %109 = vector.multi_reduction <minimumf>, %108, %cst_60 [1] : vector<16x16xf32> to vector<16xf32>
    %110 = vector.shape_cast %109 : vector<16xf32> to vector<16x1xf32>
    %111 = vector.broadcast %110 : vector<16x1xf32> to vector<16x16xf32>
    %112 = arith.cmpf oeq, %108, %111 : vector<16x16xf32>
    %c16_i32_61 = arith.constant 16 : i32
    %113 = vector.broadcast %c16_i32_61 : i32 to vector<16x16xi32>
    %114 = arith.select %112, %10, %113 : vector<16x16xi1>, vector<16x16xi32>
    %cst_62 = arith.constant dense<2147483647> : vector<16xi32>
    %115 = vector.multi_reduction <minsi>, %114, %cst_62 [1] : vector<16x16xi32> to vector<16xi32>
    %116 = vector.shape_cast %115 : vector<16xi32> to vector<16x1xi32>
    %c0_63 = arith.constant 0 : index
    %c7 = arith.constant 7 : index
    %117 = vector.load %arg4[%c0_63, %c7] : memref<16x128xi32, #tpu.memory_space<vmem>>, vector<16x1xi32>
    tpu.vector_store %arg4[%c0_63, %c7], %116 {strides = array<i32>} : memref<16x128xi32, #tpu.memory_space<vmem>>, vector<16x1xi32>,
    %c0_64 = arith.constant 0 : index
    %c7_65 = arith.constant 7 : index
    %118 = vector.load %arg5[%c0_64, %c7_65] : memref<16x128xf32, #tpu.memory_space<vmem>>, vector<16x1xf32>
    tpu.vector_store %arg5[%c0_64, %c7_65], %110 {strides = array<i32>} : memref<16x128xf32, #tpu.memory_space<vmem>>, vector<16x1xf32>,
    %119 = vector.broadcast %116 : vector<16x1xi32> to vector<16x16xi32>
    %120 = arith.cmpi eq, %10, %119 : vector<16x16xi32>
    %cst_66 = arith.constant 0x7F800000 : f32
    %121 = vector.broadcast %cst_66 : f32 to vector<16x16xf32>
    %122 = arith.select %120, %121, %108 : vector<16x16xi1>, vector<16x16xf32>
    %cst_67 = arith.constant dense<0x7F800000> : vector<16xf32>
    %123 = vector.multi_reduction <minimumf>, %122, %cst_67 [1] : vector<16x16xf32> to vector<16xf32>
    %124 = vector.shape_cast %123 : vector<16xf32> to vector<16x1xf32>
    %125 = vector.broadcast %124 : vector<16x1xf32> to vector<16x16xf32>
    %126 = arith.cmpf oeq, %122, %125 : vector<16x16xf32>
    %c16_i32_68 = arith.constant 16 : i32
    %127 = vector.broadcast %c16_i32_68 : i32 to vector<16x16xi32>
    %128 = arith.select %126, %10, %127 : vector<16x16xi1>, vector<16x16xi32>
    %cst_69 = arith.constant dense<2147483647> : vector<16xi32>
    %129 = vector.multi_reduction <minsi>, %128, %cst_69 [1] : vector<16x16xi32> to vector<16xi32>
    %130 = vector.shape_cast %129 : vector<16xi32> to vector<16x1xi32>
    %c0_70 = arith.constant 0 : index
    %c8 = arith.constant 8 : index
    %131 = vector.load %arg4[%c0_70, %c8] : memref<16x128xi32, #tpu.memory_space<vmem>>, vector<16x1xi32>
    tpu.vector_store %arg4[%c0_70, %c8], %130 {strides = array<i32>} : memref<16x128xi32, #tpu.memory_space<vmem>>, vector<16x1xi32>,
    %c0_71 = arith.constant 0 : index
    %c8_72 = arith.constant 8 : index
    %132 = vector.load %arg5[%c0_71, %c8_72] : memref<16x128xf32, #tpu.memory_space<vmem>>, vector<16x1xf32>
    tpu.vector_store %arg5[%c0_71, %c8_72], %124 {strides = array<i32>} : memref<16x128xf32, #tpu.memory_space<vmem>>, vector<16x1xf32>,
    %133 = vector.broadcast %130 : vector<16x1xi32> to vector<16x16xi32>
    %134 = arith.cmpi eq, %10, %133 : vector<16x16xi32>
    %cst_73 = arith.constant 0x7F800000 : f32
    %135 = vector.broadcast %cst_73 : f32 to vector<16x16xf32>
    %136 = arith.select %134, %135, %122 : vector<16x16xi1>, vector<16x16xf32>
    %cst_74 = arith.constant dense<0x7F800000> : vector<16xf32>
    %137 = vector.multi_reduction <minimumf>, %136, %cst_74 [1] : vector<16x16xf32> to vector<16xf32>
    %138 = vector.shape_cast %137 : vector<16xf32> to vector<16x1xf32>
    %139 = vector.broadcast %138 : vector<16x1xf32> to vector<16x16xf32>
    %140 = arith.cmpf oeq, %136, %139 : vector<16x16xf32>
    %c16_i32_75 = arith.constant 16 : i32
    %141 = vector.broadcast %c16_i32_75 : i32 to vector<16x16xi32>
    %142 = arith.select %140, %10, %141 : vector<16x16xi1>, vector<16x16xi32>
    %cst_76 = arith.constant dense<2147483647> : vector<16xi32>
    %143 = vector.multi_reduction <minsi>, %142, %cst_76 [1] : vector<16x16xi32> to vector<16xi32>
    %144 = vector.shape_cast %143 : vector<16xi32> to vector<16x1xi32>
    %c0_77 = arith.constant 0 : index
    %c9 = arith.constant 9 : index
    %145 = vector.load %arg4[%c0_77, %c9] : memref<16x128xi32, #tpu.memory_space<vmem>>, vector<16x1xi32>
    tpu.vector_store %arg4[%c0_77, %c9], %144 {strides = array<i32>} : memref<16x128xi32, #tpu.memory_space<vmem>>, vector<16x1xi32>,
    %c0_78 = arith.constant 0 : index
    %c9_79 = arith.constant 9 : index
    %146 = vector.load %arg5[%c0_78, %c9_79] : memref<16x128xf32, #tpu.memory_space<vmem>>, vector<16x1xf32>
    tpu.vector_store %arg5[%c0_78, %c9_79], %138 {strides = array<i32>} : memref<16x128xf32, #tpu.memory_space<vmem>>, vector<16x1xf32>,
    %147 = vector.broadcast %144 : vector<16x1xi32> to vector<16x16xi32>
    %148 = arith.cmpi eq, %10, %147 : vector<16x16xi32>
    %cst_80 = arith.constant 0x7F800000 : f32
    %149 = vector.broadcast %cst_80 : f32 to vector<16x16xf32>
    %150 = arith.select %148, %149, %136 : vector<16x16xi1>, vector<16x16xf32>
    %cst_81 = arith.constant dense<0x7F800000> : vector<16xf32>
    %151 = vector.multi_reduction <minimumf>, %150, %cst_81 [1] : vector<16x16xf32> to vector<16xf32>
    %152 = vector.shape_cast %151 : vector<16xf32> to vector<16x1xf32>
    %153 = vector.broadcast %152 : vector<16x1xf32> to vector<16x16xf32>
    %154 = arith.cmpf oeq, %150, %153 : vector<16x16xf32>
    %c16_i32_82 = arith.constant 16 : i32
    %155 = vector.broadcast %c16_i32_82 : i32 to vector<16x16xi32>
    %156 = arith.select %154, %10, %155 : vector<16x16xi1>, vector<16x16xi32>
    %cst_83 = arith.constant dense<2147483647> : vector<16xi32>
    %157 = vector.multi_reduction <minsi>, %156, %cst_83 [1] : vector<16x16xi32> to vector<16xi32>
    %158 = vector.shape_cast %157 : vector<16xi32> to vector<16x1xi32>
    %c0_84 = arith.constant 0 : index
    %c10 = arith.constant 10 : index
    %159 = vector.load %arg4[%c0_84, %c10] : memref<16x128xi32, #tpu.memory_space<vmem>>, vector<16x1xi32>
    tpu.vector_store %arg4[%c0_84, %c10], %158 {strides = array<i32>} : memref<16x128xi32, #tpu.memory_space<vmem>>, vector<16x1xi32>,
    %c0_85 = arith.constant 0 : index
    %c10_86 = arith.constant 10 : index
    %160 = vector.load %arg5[%c0_85, %c10_86] : memref<16x128xf32, #tpu.memory_space<vmem>>, vector<16x1xf32>
    tpu.vector_store %arg5[%c0_85, %c10_86], %152 {strides = array<i32>} : memref<16x128xf32, #tpu.memory_space<vmem>>, vector<16x1xf32>,
    return
  }
  func.func @transform_0(%arg0: i32) -> (i32, i32) {
    %c0_i32 = arith.constant 0 : i32
    %c0_i32_0 = arith.constant 0 : i32
    return %arg0, %c0_i32 : i32, i32
  }
  func.func @transform_1(%arg0: i32) -> (i32, i32) {
    %c0_i32 = arith.constant 0 : i32
    %c0_i32_0 = arith.constant 0 : i32
    return %arg0, %c0_i32 : i32, i32
  }
  func.func @transform_2(%arg0: i32) -> (i32, i32) {
    %c0_i32 = arith.constant 0 : i32
    %c0_i32_0 = arith.constant 0 : i32
    return %arg0, %c0_i32 : i32, i32
  }
  func.func @transform_3(%arg0: i32) -> (i32, i32) {
    %c0_i32 = arith.constant 0 : i32
    %c0_i32_0 = arith.constant 0 : i32
    return %arg0, %c0_i32 : i32, i32
  }
  func.func @transform_4(%arg0: i32) -> (i32, i32) {
    %c0_i32 = arith.constant 0 : i32
    %c0_i32_0 = arith.constant 0 : i32
    return %arg0, %c0_i32 : i32, i32
  }
}

</mosaic_0001>

<bundles_post_ra>
// kernel: tpu_custom_call.1
= control target key start
LH: loop header
LB: loop body
LE: loop exit
PB: predicated region body
PF: predicated region fallthrough
CT: control target
= control target key end

     0   :  { %10 = vsyncpa [#allocation3], 0  ;;  %s1081_s0 = inlined_call_operand.hbm [shape: f32[16,16], index: 0, kind: input, shape index: {}]   ;;  %s1082_s1 = inlined_call_operand.hbm [shape: f32[16,16], index: 1, kind: input, shape index: {}]   ;;  %s1083_s2 = inlined_call_operand.vmem [shape: f32[16,1], index: 2, kind: output, shape index: {0}]   ;;  %s1084_s3 = inlined_call_operand.hbm [shape: s32[16,128], index: 3, kind: output, shape index: {1}]   ;;  %s1085_s4 = inlined_call_operand.hbm [shape: f32[16,128], index: 4, kind: output, shape index: {2}]  }
   0x1   :  { %11 = vsyncpa [#allocation6], 0 }
   0x2   :  { %12 = vsyncpa [#allocation4], 0 }
   0x3   :  { %13 = vsyncpa [#allocation9], 0  ;;  %s833_s15 = smov [#allocation2]   ;;  %s737_s19 = scalar_lea.hbm %s1081_s0, 256 }
   0x4   :  { %s19_s16 = sshll.u32 %s833_s15, 4  ;;  %p738_p0 = scmp.ne.s32.totalorder %s1081_s0, %s737_s19  ;;  %s20_s16 = int_to_ptr.vmem [resolvable:$true] %s19_s16 }
   0x5   :  { %p741_p1 = scmp.lt.u32.totalorder %s737_s19, %s1081_s0 }
   0x7   :  { %p743_p2 = pnand %p741_p1, %p738_p0 }
   0x9   :  { %746 = shalt.err (!%p743_p2)
}
   0xa   :  { %s747_s24 = scalar_lea.vmem %s20_s16, 256  ;;  %p752_p4 = scmp.lt.s32.totalorder %s20_s16, %s20_s16 }
   0xb   :  { %p748_p3 = scmp.ne.s32.totalorder %s20_s16, %s747_s24  ;;  %p753_p5 = scmp.lt.s32.totalorder %s747_s24, %s747_s24 }
   0xd   :  { %p754_p6 = por %p753_p5, %p752_p4 }
   0xf   :  { %p755_p7 = pnand %p754_p6, %p748_p3 }
  0x11   :  { %758 = shalt.err (!%p755_p7)
}
  0x12   :  { %s834_s25 = smov 128   ;;  %s835_s26 = smov 8  }
  0x13   :  { %25 = dma.hbm_to_vmem [thread:$0]  %s1081_s0, 256, %s20_s16, [#allocation3], %s834_s25, %s834_s25, %s835_s26  }
  0x14   :  { %s836_s29 = smov [#allocation5]   ;;  %s759_s7 = scalar_lea.hbm %s1082_s1, 256 }
  0x15   :  { %s31_s30 = sshll.u32 %s836_s29, 4  ;;  %p760_p8 = scmp.ne.s32.totalorder %s1082_s1, %s759_s7  ;;  %s32_s30 = int_to_ptr.vmem [resolvable:$true] %s31_s30 }
  0x16   :  { %p763_p9 = scmp.lt.u32.totalorder %s759_s7, %s1082_s1 }
  0x18   :  { %p765_p10 = pnand %p763_p9, %p760_p8 }
  0x1a   :  { %768 = shalt.err (!%p765_p10)
}
  0x1b   :  { %s769_s12 = scalar_lea.vmem %s32_s30, 256  ;;  %p774_p12 = scmp.lt.s32.totalorder %s32_s30, %s32_s30 }
  0x1c   :  { %p770_p11 = scmp.ne.s32.totalorder %s32_s30, %s769_s12  ;;  %p775_p13 = scmp.lt.s32.totalorder %s769_s12, %s769_s12 }
  0x1e   :  { %p776_p0 = por %p775_p13, %p774_p12 }
  0x20   :  { %p777_p1 = pnand %p776_p0, %p770_p11 }
  0x22   :  { %780 = shalt.err (!%p777_p1)
}
  0x23   :  { %37 = dma.hbm_to_vmem [thread:$0]  %s1082_s1, 256, %s32_s30, [#allocation6], %s834_s25, %s834_s25, %s835_s26  }
  0x24   :  { %825 = dma.done.wait [#allocation3], 256  }
  0x25   :  { %826 = vsyncadd [#allocation3], 4294967040 }
  0x26   :  { %827 = dma.done.wait [#allocation6], 256  }
  0x27   :  { %828 = vsyncadd [#allocation6], 4294967040  ;;  %v837_v0 = vmov 0.0   ;;  %vm50_vm0 = vcmask 130048   ;;  %v897_v1 = vld [vmem:[#allocation2] sm:$0xff]  ;;  %v899_v2 = vld [vmem:[#allocation2 + $0x8] sm:$0xff]  ;;  %v139_v5 = vlaneseq }
  0x28   :  { %137 = vst [vmem:[#allocation8] sm:$0xff] %v837_v0  ;;  %138 = vst [vmem:[#allocation8 + $0x8] sm:$0xff] %v837_v0  ;;  %v141_v3 = vsel %vm50_vm0, %v897_v1, inf  ;;  %v144_v4 = vsel %vm50_vm0, %v899_v2, inf  ;;  %vm132_vm1 = vcmask 7168   ;;  %v838_v17 = vmov 0  }
  0x29   :  { %142 = vmin.xlane.f32.xlu0 %v141_v3  ;;  %v905_v6 = vand.u32 127, %v139_v5  ;;  %135 = vst [vmem:[#allocation7] sm:$0xff] %v838_v17  ;;  %136 = vst [vmem:[#allocation7 + $0x8] sm:$0xff] %v838_v17  ;;  %vm229_vm8 = vcmask 15368   ;;  %vm278_vm15 = vcmask 23568   ;;  %s840_s15 = smov [#allocation8]  }
  0x2a   :  { %s694_s16 = sshll.u32 %s840_s15, 4  ;;  %s695_s16 = int_to_ptr.vmem [resolvable:$true] %s694_s16 }
  0x2b   :  { %s781_s19 = scalar_lea.vmem %s695_s16, 256  ;;  %p786_p3 = scmp.lt.s32.totalorder %s695_s16, %s695_s16 }
  0x2c   :  { %p782_p2 = scmp.ne.s32.totalorder %s695_s16, %s781_s19  ;;  %p787_p4 = scmp.lt.s32.totalorder %s781_s19, %s781_s19 }
  0x2d   :  { %145 = vmin.xlane.f32.xlu0 %v144_v4 }
  0x2e   :  { %p788_p5 = por %p787_p4, %p786_p3 }
  0x30   :  { %p789_p6 = pnand %p788_p5, %p782_p2 }
  0xb6   :  { %v143_v7 = vpop.xlane.xlu0 %142 }
  0xb7   :  { %vm147_vm2 = vcmp.eq.f32.partialorder %v897_v1, %v143_v7  ;;  %183 = vst.msk [vmem:[#allocation8] sm:$0xff] %vm132_vm1, %v143_v7 }
  0xb8   :  { %v149_v8 = vsel %vm147_vm2, %v905_v6, 16 }
  0xb9   :  { %v151_v9 = vsel %vm50_vm0, %v149_v8, 2147483647 }
  0xba   :  { %v146_v10 = vpop.xlane.xlu0 %145  ;;  %v153_v11 = vshra.s32 %v151_v9, 16  ;;  %v152_v18 = vand.u32 65535, %v151_v9 }
  0xbb   :  { %vm148_vm3 = vcmp.eq.f32.partialorder %v899_v2, %v146_v10  ;;  %184 = vst.msk [vmem:[#allocation8 + $0x8] sm:$0xff] %vm132_vm1, %v146_v10 }
  0xbc   :  { %v150_v12 = vsel %vm148_vm3, %v905_v6, 16  ;;  %v155_v13 = vcvt.s32.f32 %v153_v11  ;;  %v154_v20 = vcvt.s32.f32 %v152_v18 }
  0xbd   :  { %v166_v14 = vsel %vm50_vm0, %v150_v12, 2147483647 }
  0xbe   :  { %156 = vmin.xlane.f32.xlu1 %v155_v13  ;;  %v168_v15 = vshra.s32 %v166_v14, 16  ;;  %v167_v21 = vand.u32 65535, %v166_v14 }
  0xc0   :  { %v170_v16 = vcvt.s32.f32 %v168_v15  ;;  %v169_v24 = vcvt.s32.f32 %v167_v21 }
  0xc2   :  { %171 = vmin.xlane.f32.xlu1 %v170_v16 }
 0x14b   :  { %v157_v19 = vpop.xlane.xlu1 %156 }
 0x14c   :  { %vm158_vm4 = vcmp.eq.f32.partialorder %v155_v13, %v157_v19  ;;  %v163_v26 = vcvt.f32.s32 %v157_v19 }
 0x14d   :  { %v159_v22 = vsel %vm158_vm4, %v154_v20, inf }
 0x14e   :  { %160 = vmin.xlane.f32.xlu0 %v159_v22  ;;  %v164_v28 = vshll.u32 %v163_v26, 16 }
 0x14f   :  { %v172_v23 = vpop.xlane.xlu1 %171 }
 0x150   :  { %vm173_vm5 = vcmp.eq.f32.partialorder %v170_v16, %v172_v23  ;;  %v178_v29 = vcvt.f32.s32 %v172_v23 }
 0x151   :  { %v174_v25 = vsel %vm173_vm5, %v169_v24, inf }
 0x152   :  { %175 = vmin.xlane.f32.xlu1 %v174_v25  ;;  %v179_v33 = vshll.u32 %v178_v29, 16 }
 0x1db   :  { %v161_v27 = vpop.xlane.xlu0 %160 }
 0x1dc   :  { %v162_v30 = vcvt.f32.s32 %v161_v27 }
 0x1de   :  { %v165_v31 = vadd.s32 %v164_v28, %v162_v30 }
 0x1df   :  { %v176_v32 = vpop.xlane.xlu1 %175 }
 0x1e0   :  { %181 = vst.msk [vmem:[#allocation7] sm:$0xff] %vm132_vm1, %v165_v31  ;;  %v177_v34 = vcvt.f32.s32 %v176_v32  ;;  %vm185_vm6 = vcmp.eq.s32.totalorder %v905_v6, %v165_v31 }
 0x1e1   :  { %v187_v35 = vsel %vm185_vm6, inf, %v897_v1 }
 0x1e2   :  { %v180_v36 = vadd.s32 %v179_v33, %v177_v34  ;;  %v189_v37 = vsel %vm50_vm0, %v187_v35, inf }
 0x1e3   :  { %190 = vmin.xlane.f32.xlu0 %v189_v37 }
 0x1e4   :  { %182 = vst.msk [vmem:[#allocation7 + $0x8] sm:$0xff] %vm132_vm1, %v180_v36  ;;  %vm186_vm7 = vcmp.eq.s32.totalorder %v905_v6, %v180_v36 }
 0x1e5   :  { %v188_v38 = vsel %vm186_vm7, inf, %v899_v2 }
 0x1e6   :  { %v192_v39 = vsel %vm50_vm0, %v188_v38, inf }
 0x1e7   :  { %193 = vmin.xlane.f32.xlu1 %v192_v39 }
 0x270   :  { %v191_v40 = vpop.xlane.xlu0 %190 }
 0x271   :  { %vm195_vm9 = vcmp.eq.f32.partialorder %v187_v35, %v191_v40  ;;  %232 = vst.msk [vmem:[#allocation8] sm:$0xff] %vm229_vm8, %v191_v40 }
 0x272   :  { %v197_v41 = vsel %vm195_vm9, %v905_v6, 16 }
 0x273   :  { %v199_v42 = vsel %vm50_vm0, %v197_v41, 2147483647 }
 0x274   :  { %v194_v43 = vpop.xlane.xlu1 %193  ;;  %v201_v44 = vshra.s32 %v199_v42, 16  ;;  %v200_v50 = vand.u32 65535, %v199_v42 }
 0x275   :  { %vm196_vm10 = vcmp.eq.f32.partialorder %v188_v38, %v194_v43  ;;  %233 = vst.msk [vmem:[#allocation8 + $0x8] sm:$0xff] %vm229_vm8, %v194_v43 }
 0x276   :  { %v198_v45 = vsel %vm196_vm10, %v905_v6, 16  ;;  %v203_v46 = vcvt.s32.f32 %v201_v44  ;;  %v202_v52 = vcvt.s32.f32 %v200_v50 }
 0x277   :  { %v214_v47 = vsel %vm50_vm0, %v198_v45, 2147483647 }
 0x278   :  { %204 = vmin.xlane.f32.xlu0 %v203_v46  ;;  %v216_v48 = vshra.s32 %v214_v47, 16  ;;  %v215_v53 = vand.u32 65535, %v214_v47 }
 0x27a   :  { %v218_v49 = vcvt.s32.f32 %v216_v48  ;;  %v217_v56 = vcvt.s32.f32 %v215_v53 }
 0x27c   :  { %219 = vmin.xlane.f32.xlu1 %v218_v49 }
 0x305   :  { %v205_v51 = vpop.xlane.xlu0 %204 }
 0x306   :  { %vm206_vm11 = vcmp.eq.f32.partialorder %v203_v46, %v205_v51  ;;  %v211_v58 = vcvt.f32.s32 %v205_v51 }
 0x307   :  { %v207_v54 = vsel %vm206_vm11, %v202_v52, inf }
 0x308   :  { %208 = vmin.xlane.f32.xlu0 %v207_v54  ;;  %v212_v60 = vshll.u32 %v211_v58, 16 }
 0x309   :  { %v220_v55 = vpop.xlane.xlu1 %219 }
 0x30a   :  { %vm221_vm12 = vcmp.eq.f32.partialorder %v218_v49, %v220_v55  ;;  %v226_v61 = vcvt.f32.s32 %v220_v55 }
 0x30b   :  { %v222_v57 = vsel %vm221_vm12, %v217_v56, inf }
 0x30c   :  { %223 = vmin.xlane.f32.xlu1 %v222_v57  ;;  %v227_v3 = vshll.u32 %v226_v61, 16 }
 0x395   :  { %v209_v59 = vpop.xlane.xlu0 %208 }
 0x396   :  { %v210_v62 = vcvt.f32.s32 %v209_v59 }
 0x398   :  { %v213_v63 = vadd.s32 %v212_v60, %v210_v62 }
 0x399   :  { %v224_v0 = vpop.xlane.xlu1 %223 }
 0x39a   :  { %230 = vst.msk [vmem:[#allocation7] sm:$0xff] %vm229_vm8, %v213_v63  ;;  %v225_v4 = vcvt.f32.s32 %v224_v0  ;;  %vm234_vm13 = vcmp.eq.s32.totalorder %v905_v6, %v213_v63 }
 0x39b   :  { %v236_v5 = vsel %vm234_vm13, inf, %v187_v35 }
 0x39c   :  { %v228_v7 = vadd.s32 %v227_v3, %v225_v4  ;;  %v238_v8 = vsel %vm50_vm0, %v236_v5, inf }
 0x39d   :  { %239 = vmin.xlane.f32.xlu0 %v238_v8 }
 0x39e   :  { %231 = vst.msk [vmem:[#allocation7 + $0x8] sm:$0xff] %vm229_vm8, %v228_v7  ;;  %vm235_vm14 = vcmp.eq.s32.totalorder %v905_v6, %v228_v7  ;;  %vm327_vm8 = vcmask 31768  }
 0x39f   :  { %v237_v9 = vsel %vm235_vm14, inf, %v188_v38 }
 0x3a0   :  { %v241_v10 = vsel %vm50_vm0, %v237_v9, inf }
 0x3a1   :  { %242 = vmin.xlane.f32.xlu1 %v241_v10 }
 0x42a   :  { %v240_v11 = vpop.xlane.xlu0 %239 }
 0x42b   :  { %vm244_vm2 = vcmp.eq.f32.partialorder %v236_v5, %v240_v11  ;;  %281 = vst.msk [vmem:[#allocation8] sm:$0xff] %vm278_vm15, %v240_v11 }
 0x42c   :  { %v246_v12 = vsel %vm244_vm2, %v905_v6, 16 }
 0x42d   :  { %v248_v13 = vsel %vm50_vm0, %v246_v12, 2147483647 }
 0x42e   :  { %v243_v14 = vpop.xlane.xlu1 %242  ;;  %v250_v15 = vshra.s32 %v248_v13, 16  ;;  %v249_v21 = vand.u32 65535, %v248_v13 }
 0x42f   :  { %vm245_vm3 = vcmp.eq.f32.partialorder %v237_v9, %v243_v14  ;;  %282 = vst.msk [vmem:[#allocation8 + $0x8] sm:$0xff] %vm278_vm15, %v243_v14 }
 0x430   :  { %v247_v16 = vsel %vm245_vm3, %v905_v6, 16  ;;  %v252_v17 = vcvt.s32.f32 %v250_v15  ;;  %v251_v23 = vcvt.s32.f32 %v249_v21 }
 0x431   :  { %v263_v18 = vsel %vm50_vm0, %v247_v16, 2147483647 }
 0x432   :  { %253 = vmin.xlane.f32.xlu0 %v252_v17  ;;  %v265_v19 = vshra.s32 %v263_v18, 16  ;;  %v264_v24 = vand.u32 65535, %v263_v18 }
 0x434   :  { %v267_v20 = vcvt.s32.f32 %v265_v19  ;;  %v266_v27 = vcvt.s32.f32 %v264_v24 }
 0x436   :  { %268 = vmin.xlane.f32.xlu1 %v267_v20 }
 0x4bf   :  { %v254_v22 = vpop.xlane.xlu0 %253 }
 0x4c0   :  { %vm255_vm4 = vcmp.eq.f32.partialorder %v252_v17, %v254_v22  ;;  %v260_v29 = vcvt.f32.s32 %v254_v22 }
 0x4c1   :  { %v256_v25 = vsel %vm255_vm4, %v251_v23, inf }
 0x4c2   :  { %257 = vmin.xlane.f32.xlu0 %v256_v25  ;;  %v261_v31 = vshll.u32 %v260_v29, 16 }
 0x4c3   :  { %v269_v26 = vpop.xlane.xlu1 %268 }
 0x4c4   :  { %vm270_vm5 = vcmp.eq.f32.partialorder %v267_v20, %v269_v26  ;;  %v275_v32 = vcvt.f32.s32 %v269_v26 }
 0x4c5   :  { %v271_v28 = vsel %vm270_vm5, %v266_v27, inf }
 0x4c6   :  { %272 = vmin.xlane.f32.xlu1 %v271_v28  ;;  %v276_v36 = vshll.u32 %v275_v32, 16 }
 0x54f   :  { %v258_v30 = vpop.xlane.xlu0 %257 }
 0x550   :  { %v259_v33 = vcvt.f32.s32 %v258_v30 }
 0x552   :  { %v262_v34 = vadd.s32 %v261_v31, %v259_v33 }
 0x553   :  { %v273_v35 = vpop.xlane.xlu1 %272 }
 0x554   :  { %279 = vst.msk [vmem:[#allocation7] sm:$0xff] %vm278_vm15, %v262_v34  ;;  %v274_v37 = vcvt.f32.s32 %v273_v35  ;;  %vm283_vm6 = vcmp.eq.s32.totalorder %v905_v6, %v262_v34 }
 0x555   :  { %v285_v38 = vsel %vm283_vm6, inf, %v236_v5 }
 0x556   :  { %v277_v39 = vadd.s32 %v276_v36, %v274_v37  ;;  %v287_v40 = vsel %vm50_vm0, %v285_v38, inf }
 0x557   :  { %288 = vmin.xlane.f32.xlu0 %v287_v40 }
 0x558   :  { %280 = vst.msk [vmem:[#allocation7 + $0x8] sm:$0xff] %vm278_vm15, %v277_v39  ;;  %vm284_vm7 = vcmp.eq.s32.totalorder %v905_v6, %v277_v39  ;;  %vm376_vm15 = vcmask 39968  }
 0x559   :  { %v286_v41 = vsel %vm284_vm7, inf, %v237_v9 }
 0x55a   :  { %v290_v42 = vsel %vm50_vm0, %v286_v41, inf }
 0x55b   :  { %291 = vmin.xlane.f32.xlu1 %v290_v42 }
 0x5e4   :  { %v289_v43 = vpop.xlane.xlu0 %288 }
 0x5e5   :  { %vm293_vm9 = vcmp.eq.f32.partialorder %v285_v38, %v289_v43  ;;  %330 = vst.msk [vmem:[#allocation8] sm:$0xff] %vm327_vm8, %v289_v43 }
 0x5e6   :  { %v295_v44 = vsel %vm293_vm9, %v905_v6, 16 }
 0x5e7   :  { %v297_v45 = vsel %vm50_vm0, %v295_v44, 2147483647 }
 0x5e8   :  { %v292_v46 = vpop.xlane.xlu1 %291  ;;  %v299_v47 = vshra.s32 %v297_v45, 16  ;;  %v298_v53 = vand.u32 65535, %v297_v45 }
 0x5e9   :  { %vm294_vm10 = vcmp.eq.f32.partialorder %v286_v41, %v292_v46  ;;  %331 = vst.msk [vmem:[#allocation8 + $0x8] sm:$0xff] %vm327_vm8, %v292_v46 }
 0x5ea   :  { %v296_v48 = vsel %vm294_vm10, %v905_v6, 16  ;;  %v301_v49 = vcvt.s32.f32 %v299_v47  ;;  %v300_v55 = vcvt.s32.f32 %v298_v53 }
 0x5eb   :  { %v312_v50 = vsel %vm50_vm0, %v296_v48, 2147483647 }
 0x5ec   :  { %302 = vmin.xlane.f32.xlu0 %v301_v49  ;;  %v314_v51 = vshra.s32 %v312_v50, 16  ;;  %v313_v56 = vand.u32 65535, %v312_v50 }
 0x5ee   :  { %v316_v52 = vcvt.s32.f32 %v314_v51  ;;  %v315_v59 = vcvt.s32.f32 %v313_v56 }
 0x5f0   :  { %317 = vmin.xlane.f32.xlu1 %v316_v52 }
 0x679   :  { %v303_v54 = vpop.xlane.xlu0 %302 }
 0x67a   :  { %vm304_vm11 = vcmp.eq.f32.partialorder %v301_v49, %v303_v54  ;;  %v309_v61 = vcvt.f32.s32 %v303_v54 }
 0x67b   :  { %v305_v57 = vsel %vm304_vm11, %v300_v55, inf }
 0x67c   :  { %306 = vmin.xlane.f32.xlu0 %v305_v57  ;;  %v310_v63 = vshll.u32 %v309_v61, 16 }
 0x67d   :  { %v318_v58 = vpop.xlane.xlu1 %317 }
 0x67e   :  { %vm319_vm12 = vcmp.eq.f32.partialorder %v316_v52, %v318_v58  ;;  %v324_v0 = vcvt.f32.s32 %v318_v58 }
 0x67f   :  { %v320_v60 = vsel %vm319_vm12, %v315_v59, inf }
 0x680   :  { %321 = vmin.xlane.f32.xlu1 %v320_v60  ;;  %v325_v7 = vshll.u32 %v324_v0, 16 }
 0x709   :  { %v307_v62 = vpop.xlane.xlu0 %306 }
 0x70a   :  { %v308_v3 = vcvt.f32.s32 %v307_v62 }
 0x70c   :  { %v311_v4 = vadd.s32 %v310_v63, %v308_v3 }
 0x70d   :  { %v322_v5 = vpop.xlane.xlu1 %321 }
 0x70e   :  { %328 = vst.msk [vmem:[#allocation7] sm:$0xff] %vm327_vm8, %v311_v4  ;;  %v323_v8 = vcvt.f32.s32 %v322_v5  ;;  %vm332_vm13 = vcmp.eq.s32.totalorder %v905_v6, %v311_v4 }
 0x70f   :  { %v334_v9 = vsel %vm332_vm13, inf, %v285_v38 }
 0x710   :  { %v326_v10 = vadd.s32 %v325_v7, %v323_v8  ;;  %v336_v11 = vsel %vm50_vm0, %v334_v9, inf }
 0x711   :  { %337 = vmin.xlane.f32.xlu0 %v336_v11 }
 0x712   :  { %329 = vst.msk [vmem:[#allocation7 + $0x8] sm:$0xff] %vm327_vm8, %v326_v10  ;;  %vm333_vm14 = vcmp.eq.s32.totalorder %v905_v6, %v326_v10  ;;  %vm425_vm8 = vcmask 48168  }
 0x713   :  { %v335_v12 = vsel %vm333_vm14, inf, %v286_v41 }
 0x714   :  { %v339_v13 = vsel %vm50_vm0, %v335_v12, inf }
 0x715   :  { %340 = vmin.xlane.f32.xlu1 %v339_v13 }
 0x79e   :  { %v338_v14 = vpop.xlane.xlu0 %337 }
 0x79f   :  { %vm342_vm2 = vcmp.eq.f32.partialorder %v334_v9, %v338_v14  ;;  %379 = vst.msk [vmem:[#allocation8] sm:$0xff] %vm376_vm15, %v338_v14 }
 0x7a0   :  { %v344_v15 = vsel %vm342_vm2, %v905_v6, 16 }
 0x7a1   :  { %v346_v16 = vsel %vm50_vm0, %v344_v15, 2147483647 }
 0x7a2   :  { %v341_v17 = vpop.xlane.xlu1 %340  ;;  %v348_v18 = vshra.s32 %v346_v16, 16  ;;  %v347_v24 = vand.u32 65535, %v346_v16 }
 0x7a3   :  { %vm343_vm3 = vcmp.eq.f32.partialorder %v335_v12, %v341_v17  ;;  %380 = vst.msk [vmem:[#allocation8 + $0x8] sm:$0xff] %vm376_vm15, %v341_v17 }
 0x7a4   :  { %v345_v19 = vsel %vm343_vm3, %v905_v6, 16  ;;  %v350_v20 = vcvt.s32.f32 %v348_v18  ;;  %v349_v26 = vcvt.s32.f32 %v347_v24 }
 0x7a5   :  { %v361_v21 = vsel %vm50_vm0, %v345_v19, 2147483647 }
 0x7a6   :  { %351 = vmin.xlane.f32.xlu0 %v350_v20  ;;  %v363_v22 = vshra.s32 %v361_v21, 16  ;;  %v362_v27 = vand.u32 65535, %v361_v21 }
 0x7a8   :  { %v365_v23 = vcvt.s32.f32 %v363_v22  ;;  %v364_v30 = vcvt.s32.f32 %v362_v27 }
 0x7aa   :  { %366 = vmin.xlane.f32.xlu1 %v365_v23 }
 0x833   :  { %v352_v25 = vpop.xlane.xlu0 %351 }
 0x834   :  { %vm353_vm4 = vcmp.eq.f32.partialorder %v350_v20, %v352_v25  ;;  %v358_v32 = vcvt.f32.s32 %v352_v25 }
 0x835   :  { %v354_v28 = vsel %vm353_vm4, %v349_v26, inf }
 0x836   :  { %355 = vmin.xlane.f32.xlu0 %v354_v28  ;;  %v359_v34 = vshll.u32 %v358_v32, 16 }
 0x837   :  { %v367_v29 = vpop.xlane.xlu1 %366 }
 0x838   :  { %vm368_vm5 = vcmp.eq.f32.partialorder %v365_v23, %v367_v29  ;;  %v373_v35 = vcvt.f32.s32 %v367_v29 }
 0x839   :  { %v369_v31 = vsel %vm368_vm5, %v364_v30, inf }
 0x83a   :  { %370 = vmin.xlane.f32.xlu1 %v369_v31  ;;  %v374_v39 = vshll.u32 %v373_v35, 16 }
 0x8c3   :  { %v356_v33 = vpop.xlane.xlu0 %355 }
 0x8c4   :  { %v357_v36 = vcvt.f32.s32 %v356_v33 }
 0x8c6   :  { %v360_v37 = vadd.s32 %v359_v34, %v357_v36 }
 0x8c7   :  { %v371_v38 = vpop.xlane.xlu1 %370 }
 0x8c8   :  { %377 = vst.msk [vmem:[#allocation7] sm:$0xff] %vm376_vm15, %v360_v37  ;;  %v372_v40 = vcvt.f32.s32 %v371_v38  ;;  %vm381_vm6 = vcmp.eq.s32.totalorder %v905_v6, %v360_v37 }
 0x8c9   :  { %v383_v41 = vsel %vm381_vm6, inf, %v334_v9 }
 0x8ca   :  { %v375_v42 = vadd.s32 %v374_v39, %v372_v40  ;;  %v385_v43 = vsel %vm50_vm0, %v383_v41, inf }
 0x8cb   :  { %386 = vmin.xlane.f32.xlu0 %v385_v43 }
 0x8cc   :  { %378 = vst.msk [vmem:[#allocation7 + $0x8] sm:$0xff] %vm376_vm15, %v375_v42  ;;  %vm382_vm7 = vcmp.eq.s32.totalorder %v905_v6, %v375_v42  ;;  %vm474_vm15 = vcmask 56368  }
 0x8cd   :  { %v384_v44 = vsel %vm382_vm7, inf, %v335_v12 }
 0x8ce   :  { %v388_v45 = vsel %vm50_vm0, %v384_v44, inf }
 0x8cf   :  { %389 = vmin.xlane.f32.xlu1 %v388_v45 }
 0x958   :  { %v387_v46 = vpop.xlane.xlu0 %386 }
 0x959   :  { %vm391_vm9 = vcmp.eq.f32.partialorder %v383_v41, %v387_v46  ;;  %428 = vst.msk [vmem:[#allocation8] sm:$0xff] %vm425_vm8, %v387_v46 }
 0x95a   :  { %v393_v47 = vsel %vm391_vm9, %v905_v6, 16 }
 0x95b   :  { %v395_v48 = vsel %vm50_vm0, %v393_v47, 2147483647 }
 0x95c   :  { %v390_v49 = vpop.xlane.xlu1 %389  ;;  %v397_v50 = vshra.s32 %v395_v48, 16  ;;  %v396_v56 = vand.u32 65535, %v395_v48 }
 0x95d   :  { %vm392_vm10 = vcmp.eq.f32.partialorder %v384_v44, %v390_v49  ;;  %429 = vst.msk [vmem:[#allocation8 + $0x8] sm:$0xff] %vm425_vm8, %v390_v49 }
 0x95e   :  { %v394_v51 = vsel %vm392_vm10, %v905_v6, 16  ;;  %v399_v52 = vcvt.s32.f32 %v397_v50  ;;  %v398_v58 = vcvt.s32.f32 %v396_v56 }
 0x95f   :  { %v410_v53 = vsel %vm50_vm0, %v394_v51, 2147483647 }
 0x960   :  { %400 = vmin.xlane.f32.xlu0 %v399_v52  ;;  %v412_v54 = vshra.s32 %v410_v53, 16  ;;  %v411_v59 = vand.u32 65535, %v410_v53 }
 0x962   :  { %v414_v55 = vcvt.s32.f32 %v412_v54  ;;  %v413_v62 = vcvt.s32.f32 %v411_v59 }
 0x964   :  { %415 = vmin.xlane.f32.xlu1 %v414_v55 }
 0x9ed   :  { %v401_v57 = vpop.xlane.xlu0 %400 }
 0x9ee   :  { %vm402_vm11 = vcmp.eq.f32.partialorder %v399_v52, %v401_v57  ;;  %v407_v0 = vcvt.f32.s32 %v401_v57 }
 0x9ef   :  { %v403_v60 = vsel %vm402_vm11, %v398_v58, inf }
 0x9f0   :  { %404 = vmin.xlane.f32.xlu0 %v403_v60  ;;  %v408_v4 = vshll.u32 %v407_v0, 16 }
 0x9f1   :  { %v416_v61 = vpop.xlane.xlu1 %415 }
 0x9f2   :  { %vm417_vm12 = vcmp.eq.f32.partialorder %v414_v55, %v416_v61  ;;  %v422_v5 = vcvt.f32.s32 %v416_v61 }
 0x9f3   :  { %v418_v63 = vsel %vm417_vm12, %v413_v62, inf }
 0x9f4   :  { %419 = vmin.xlane.f32.xlu1 %v418_v63  ;;  %v423_v10 = vshll.u32 %v422_v5, 16 }
 0xa7d   :  { %v405_v3 = vpop.xlane.xlu0 %404 }
 0xa7e   :  { %v406_v7 = vcvt.f32.s32 %v405_v3 }
 0xa80   :  { %v409_v8 = vadd.s32 %v408_v4, %v406_v7 }
 0xa81   :  { %v420_v9 = vpop.xlane.xlu1 %419 }
 0xa82   :  { %426 = vst.msk [vmem:[#allocation7] sm:$0xff] %vm425_vm8, %v409_v8  ;;  %v421_v11 = vcvt.f32.s32 %v420_v9  ;;  %vm430_vm13 = vcmp.eq.s32.totalorder %v905_v6, %v409_v8 }
 0xa83   :  { %v432_v12 = vsel %vm430_vm13, inf, %v383_v41 }
 0xa84   :  { %v424_v13 = vadd.s32 %v423_v10, %v421_v11  ;;  %v434_v14 = vsel %vm50_vm0, %v432_v12, inf }
 0xa85   :  { %435 = vmin.xlane.f32.xlu0 %v434_v14 }
 0xa86   :  { %427 = vst.msk [vmem:[#allocation7 + $0x8] sm:$0xff] %vm425_vm8, %v424_v13  ;;  %vm431_vm14 = vcmp.eq.s32.totalorder %v905_v6, %v424_v13  ;;  %vm523_vm8 = vcmask 64568  }
 0xa87   :  { %v433_v15 = vsel %vm431_vm14, inf, %v384_v44 }
 0xa88   :  { %v437_v16 = vsel %vm50_vm0, %v433_v15, inf }
 0xa89   :  { %438 = vmin.xlane.f32.xlu1 %v437_v16 }
 0xb12   :  { %v436_v17 = vpop.xlane.xlu0 %435 }
 0xb13   :  { %vm440_vm2 = vcmp.eq.f32.partialorder %v432_v12, %v436_v17  ;;  %477 = vst.msk [vmem:[#allocation8] sm:$0xff] %vm474_vm15, %v436_v17 }
 0xb14   :  { %v442_v18 = vsel %vm440_vm2, %v905_v6, 16 }
 0xb15   :  { %v444_v19 = vsel %vm50_vm0, %v442_v18, 2147483647 }
 0xb16   :  { %v439_v20 = vpop.xlane.xlu1 %438  ;;  %v446_v21 = vshra.s32 %v444_v19, 16  ;;  %v445_v27 = vand.u32 65535, %v444_v19 }
 0xb17   :  { %vm441_vm3 = vcmp.eq.f32.partialorder %v433_v15, %v439_v20  ;;  %478 = vst.msk [vmem:[#allocation8 + $0x8] sm:$0xff] %vm474_vm15, %v439_v20 }
 0xb18   :  { %v443_v22 = vsel %vm441_vm3, %v905_v6, 16  ;;  %v448_v23 = vcvt.s32.f32 %v446_v21  ;;  %v447_v29 = vcvt.s32.f32 %v445_v27 }
 0xb19   :  { %v459_v24 = vsel %vm50_vm0, %v443_v22, 2147483647 }
 0xb1a   :  { %449 = vmin.xlane.f32.xlu0 %v448_v23  ;;  %v461_v25 = vshra.s32 %v459_v24, 16  ;;  %v460_v30 = vand.u32 65535, %v459_v24 }
 0xb1c   :  { %v463_v26 = vcvt.s32.f32 %v461_v25  ;;  %v462_v33 = vcvt.s32.f32 %v460_v30 }
 0xb1e   :  { %464 = vmin.xlane.f32.xlu1 %v463_v26 }
 0xba7   :  { %v450_v28 = vpop.xlane.xlu0 %449 }
 0xba8   :  { %vm451_vm4 = vcmp.eq.f32.partialorder %v448_v23, %v450_v28  ;;  %v456_v35 = vcvt.f32.s32 %v450_v28 }
 0xba9   :  { %v452_v31 = vsel %vm451_vm4, %v447_v29, inf }
 0xbaa   :  { %453 = vmin.xlane.f32.xlu0 %v452_v31  ;;  %v457_v37 = vshll.u32 %v456_v35, 16 }
 0xbab   :  { %v465_v32 = vpop.xlane.xlu1 %464 }
 0xbac   :  { %vm466_vm5 = vcmp.eq.f32.partialorder %v463_v26, %v465_v32  ;;  %v471_v38 = vcvt.f32.s32 %v465_v32 }
 0xbad   :  { %v467_v34 = vsel %vm466_vm5, %v462_v33, inf }
 0xbae   :  { %468 = vmin.xlane.f32.xlu1 %v467_v34  ;;  %v472_v42 = vshll.u32 %v471_v38, 16 }
 0xc37   :  { %v454_v36 = vpop.xlane.xlu0 %453 }
 0xc38   :  { %v455_v39 = vcvt.f32.s32 %v454_v36 }
 0xc3a   :  { %v458_v40 = vadd.s32 %v457_v37, %v455_v39 }
 0xc3b   :  { %v469_v41 = vpop.xlane.xlu1 %468 }
 0xc3c   :  { %475 = vst.msk [vmem:[#allocation7] sm:$0xff] %vm474_vm15, %v458_v40  ;;  %v470_v43 = vcvt.f32.s32 %v469_v41  ;;  %vm479_vm6 = vcmp.eq.s32.totalorder %v905_v6, %v458_v40 }
 0xc3d   :  { %v481_v44 = vsel %vm479_vm6, inf, %v432_v12 }
 0xc3e   :  { %v473_v45 = vadd.s32 %v472_v42, %v470_v43  ;;  %v483_v46 = vsel %vm50_vm0, %v481_v44, inf }
 0xc3f   :  { %484 = vmin.xlane.f32.xlu0 %v483_v46 }
 0xc40   :  { %476 = vst.msk [vmem:[#allocation7 + $0x8] sm:$0xff] %vm474_vm15, %v473_v45  ;;  %vm480_vm7 = vcmp.eq.s32.totalorder %v905_v6, %v473_v45  ;;  %vm572_vm15 = vcmask 72768  }
 0xc41   :  { %v482_v47 = vsel %vm480_vm7, inf, %v433_v15 }
 0xc42   :  { %v486_v48 = vsel %vm50_vm0, %v482_v47, inf }
 0xc43   :  { %487 = vmin.xlane.f32.xlu1 %v486_v48 }
 0xccc   :  { %v485_v49 = vpop.xlane.xlu0 %484 }
 0xccd   :  { %vm489_vm9 = vcmp.eq.f32.partialorder %v481_v44, %v485_v49  ;;  %526 = vst.msk [vmem:[#allocation8] sm:$0xff] %vm523_vm8, %v485_v49 }
 0xcce   :  { %v491_v50 = vsel %vm489_vm9, %v905_v6, 16 }
 0xccf   :  { %v493_v51 = vsel %vm50_vm0, %v491_v50, 2147483647 }
 0xcd0   :  { %v488_v52 = vpop.xlane.xlu1 %487  ;;  %v495_v53 = vshra.s32 %v493_v51, 16  ;;  %v494_v59 = vand.u32 65535, %v493_v51 }
 0xcd1   :  { %vm490_vm10 = vcmp.eq.f32.partialorder %v482_v47, %v488_v52  ;;  %527 = vst.msk [vmem:[#allocation8 + $0x8] sm:$0xff] %vm523_vm8, %v488_v52 }
 0xcd2   :  { %v492_v54 = vsel %vm490_vm10, %v905_v6, 16  ;;  %v497_v55 = vcvt.s32.f32 %v495_v53  ;;  %v496_v61 = vcvt.s32.f32 %v494_v59 }
 0xcd3   :  { %v508_v56 = vsel %vm50_vm0, %v492_v54, 2147483647 }
 0xcd4   :  { %498 = vmin.xlane.f32.xlu0 %v497_v55  ;;  %v510_v57 = vshra.s32 %v508_v56, 16  ;;  %v509_v62 = vand.u32 65535, %v508_v56 }
 0xcd6   :  { %v512_v58 = vcvt.s32.f32 %v510_v57  ;;  %v511_v3 = vcvt.s32.f32 %v509_v62 }
 0xcd8   :  { %513 = vmin.xlane.f32.xlu1 %v512_v58 }
 0xd61   :  { %v499_v60 = vpop.xlane.xlu0 %498 }
 0xd62   :  { %vm500_vm11 = vcmp.eq.f32.partialorder %v497_v55, %v499_v60  ;;  %v505_v5 = vcvt.f32.s32 %v499_v60 }
 0xd63   :  { %v501_v63 = vsel %vm500_vm11, %v496_v61, inf }
 0xd64   :  { %502 = vmin.xlane.f32.xlu0 %v501_v63  ;;  %v506_v8 = vshll.u32 %v505_v5, 16 }
 0xd65   :  { %v514_v0 = vpop.xlane.xlu1 %513 }
 0xd66   :  { %vm515_vm12 = vcmp.eq.f32.partialorder %v512_v58, %v514_v0  ;;  %v520_v9 = vcvt.f32.s32 %v514_v0 }
 0xd67   :  { %v516_v4 = vsel %vm515_vm12, %v511_v3, inf }
 0xd68   :  { %517 = vmin.xlane.f32.xlu1 %v516_v4  ;;  %v521_v13 = vshll.u32 %v520_v9, 16 }
 0xdf1   :  { %v503_v7 = vpop.xlane.xlu0 %502 }
 0xdf2   :  { %v504_v10 = vcvt.f32.s32 %v503_v7 }
 0xdf4   :  { %v507_v11 = vadd.s32 %v506_v8, %v504_v10 }
 0xdf5   :  { %v518_v12 = vpop.xlane.xlu1 %517 }
 0xdf6   :  { %524 = vst.msk [vmem:[#allocation7] sm:$0xff] %vm523_vm8, %v507_v11  ;;  %v519_v14 = vcvt.f32.s32 %v518_v12  ;;  %vm528_vm13 = vcmp.eq.s32.totalorder %v905_v6, %v507_v11 }
 0xdf7   :  { %v530_v15 = vsel %vm528_vm13, inf, %v481_v44 }
 0xdf8   :  { %v522_v16 = vadd.s32 %v521_v13, %v519_v14  ;;  %v532_v17 = vsel %vm50_vm0, %v530_v15, inf }
 0xdf9   :  { %533 = vmin.xlane.f32.xlu0 %v532_v17 }
 0xdfa   :  { %525 = vst.msk [vmem:[#allocation7 + $0x8] sm:$0xff] %vm523_vm8, %v522_v16  ;;  %vm529_vm14 = vcmp.eq.s32.totalorder %v905_v6, %v522_v16  ;;  %vm621_vm8 = vcmask 80968  }
 0xdfb   :  { %v531_v18 = vsel %vm529_vm14, inf, %v482_v47 }
 0xdfc   :  { %v535_v19 = vsel %vm50_vm0, %v531_v18, inf }
 0xdfd   :  { %536 = vmin.xlane.f32.xlu1 %v535_v19 }
 0xe86   :  { %v534_v20 = vpop.xlane.xlu0 %533 }
 0xe87   :  { %vm538_vm2 = vcmp.eq.f32.partialorder %v530_v15, %v534_v20  ;;  %575 = vst.msk [vmem:[#allocation8] sm:$0xff] %vm572_vm15, %v534_v20 }
 0xe88   :  { %v540_v21 = vsel %vm538_vm2, %v905_v6, 16 }
 0xe89   :  { %v542_v22 = vsel %vm50_vm0, %v540_v21, 2147483647 }
 0xe8a   :  { %v537_v23 = vpop.xlane.xlu1 %536  ;;  %v544_v24 = vshra.s32 %v542_v22, 16  ;;  %v543_v30 = vand.u32 65535, %v542_v22 }
 0xe8b   :  { %vm539_vm3 = vcmp.eq.f32.partialorder %v531_v18, %v537_v23  ;;  %576 = vst.msk [vmem:[#allocation8 + $0x8] sm:$0xff] %vm572_vm15, %v537_v23  ;;  %v46_v23 = vld [vmem:[#allocation5] sm:$0xff] }
 0xe8c   :  { %v541_v25 = vsel %vm539_vm3, %v905_v6, 16  ;;  %v546_v26 = vcvt.s32.f32 %v544_v24  ;;  %v545_v32 = vcvt.s32.f32 %v543_v30  ;;  %v47_v24 = vld [vmem:[#allocation5 + $0x8] sm:$0xff] }
 0xe8d   :  { %v557_v27 = vsel %vm50_vm0, %v541_v25, 2147483647  ;;  %v839_v25 = vmov 1.0|1.0  }
 0xe8e   :  { %547 = vmin.xlane.f32.xlu0 %v546_v26  ;;  %v559_v28 = vshra.s32 %v557_v27, 16  ;;  %v558_v33 = vand.u32 65535, %v557_v27  ;;  %726 = vmatprep.subr.bf16.mxu0 %v839_v25  ;;  %v49_v27 = vmul.f32 %v47_v24, %v899_v2 }
 0xe8f   :  { %727 = vmatpush3.bf16.msra.mxu0 %v839_v25 }
 0xe90   :  { %v561_v29 = vcvt.s32.f32 %v559_v28  ;;  %v560_v36 = vcvt.s32.f32 %v558_v33 }
 0xe92   :  { %562 = vmin.xlane.f32.xlu1 %v561_v29 }
 0xf1b   :  { %v548_v31 = vpop.xlane.xlu0 %547 }
 0xf1c   :  { %vm549_vm4 = vcmp.eq.f32.partialorder %v546_v26, %v548_v31  ;;  %v554_v38 = vcvt.f32.s32 %v548_v31  ;;  %v48_v26 = vmul.f32 %v46_v23, %v897_v1 }
 0xf1d   :  { %v550_v34 = vsel %vm549_vm4, %v545_v32, inf }
 0xf1e   :  { %551 = vmin.xlane.f32.xlu0 %v550_v34  ;;  %v555_v40 = vshll.u32 %v554_v38, 16  ;;  %723 = vmatprep.mubr.msk.f32.mxu0 %vm50_vm0, %v48_v26 }
 0xf1f   :  { %v563_v35 = vpop.xlane.xlu1 %562  ;;  %724 = vmatmul.mubr.msk.f32.vlgmr.msra.gmra.mrb[0].mxu0 %vm50_vm0, %v49_v27 }
 0xf20   :  { %vm564_vm5 = vcmp.eq.f32.partialorder %v561_v29, %v563_v35  ;;  %v569_v41 = vcvt.f32.s32 %v563_v35 }
 0xf21   :  { %v565_v37 = vsel %vm564_vm5, %v560_v36, inf }
 0xf22   :  { %566 = vmin.xlane.f32.xlu1 %v565_v37  ;;  %v570_v45 = vshll.u32 %v569_v41, 16 }
 0xfab   :  { %v552_v39 = vpop.xlane.xlu0 %551 }
 0xfac   :  { %v553_v42 = vcvt.f32.s32 %v552_v39 }
 0xfae   :  { %v556_v43 = vadd.s32 %v555_v40, %v553_v42 }
 0xfaf   :  { %v567_v44 = vpop.xlane.xlu1 %566 }
 0xfb0   :  { %573 = vst.msk [vmem:[#allocation7] sm:$0xff] %vm572_vm15, %v556_v43  ;;  %v568_v46 = vcvt.f32.s32 %v567_v44  ;;  %vm577_vm6 = vcmp.eq.s32.totalorder %v905_v6, %v556_v43 }
 0xfb1   :  { %v579_v47 = vsel %vm577_vm6, inf, %v530_v15 }
 0xfb2   :  { %v571_v48 = vadd.s32 %v570_v45, %v568_v46  ;;  %v581_v49 = vsel %vm50_vm0, %v579_v47, inf }
 0xfb3   :  { %582 = vmin.xlane.f32.xlu0 %v581_v49 }
 0xfb4   :  { %574 = vst.msk [vmem:[#allocation7 + $0x8] sm:$0xff] %vm572_vm15, %v571_v48  ;;  %vm578_vm7 = vcmp.eq.s32.totalorder %v905_v6, %v571_v48  ;;  %vm670_vm15 = vcmask 89168  }
 0xfb5   :  { %v580_v50 = vsel %vm578_vm7, inf, %v531_v18 }
 0xfb6   :  { %v584_v51 = vsel %vm50_vm0, %v580_v50, inf }
 0xfb7   :  { %585 = vmin.xlane.f32.xlu1 %v584_v51 }
0x1040   :  { %v583_v52 = vpop.xlane.xlu0 %582 }
0x1041   :  { %vm587_vm9 = vcmp.eq.f32.partialorder %v579_v47, %v583_v52  ;;  %624 = vst.msk [vmem:[#allocation8] sm:$0xff] %vm621_vm8, %v583_v52 }
0x1042   :  { %v589_v53 = vsel %vm587_vm9, %v905_v6, 16 }
0x1043   :  { %v591_v54 = vsel %vm50_vm0, %v589_v53, 2147483647 }
0x1044   :  { %v586_v55 = vpop.xlane.xlu1 %585  ;;  %v593_v56 = vshra.s32 %v591_v54, 16  ;;  %v592_v62 = vand.u32 65535, %v591_v54 }
0x1045   :  { %vm588_vm10 = vcmp.eq.f32.partialorder %v580_v50, %v586_v55  ;;  %625 = vst.msk [vmem:[#allocation8 + $0x8] sm:$0xff] %vm621_vm8, %v586_v55 }
0x1046   :  { %v590_v57 = vsel %vm588_vm10, %v905_v6, 16  ;;  %v595_v58 = vcvt.s32.f32 %v593_v56  ;;  %v594_v0 = vcvt.s32.f32 %v592_v62 }
0x1047   :  { %v606_v59 = vsel %vm50_vm0, %v590_v57, 2147483647 }
0x1048   :  { %596 = vmin.xlane.f32.xlu0 %v595_v58  ;;  %v608_v60 = vshra.s32 %v606_v59, 16  ;;  %v607_v3 = vand.u32 65535, %v606_v59 }
0x104a   :  { %v610_v61 = vcvt.s32.f32 %v608_v60  ;;  %v609_v7 = vcvt.s32.f32 %v607_v3 }
0x104c   :  { %611 = vmin.xlane.f32.xlu1 %v610_v61 }
0x10d5   :  { %v597_v63 = vpop.xlane.xlu0 %596 }
0x10d6   :  { %vm598_vm11 = vcmp.eq.f32.partialorder %v595_v58, %v597_v63  ;;  %v603_v9 = vcvt.f32.s32 %v597_v63 }
0x10d7   :  { %v599_v4 = vsel %vm598_vm11, %v594_v0, inf }
0x10d8   :  { %600 = vmin.xlane.f32.xlu0 %v599_v4  ;;  %v604_v11 = vshll.u32 %v603_v9, 16 }
0x10d9   :  { %v612_v5 = vpop.xlane.xlu1 %611 }
0x10da   :  { %vm613_vm12 = vcmp.eq.f32.partialorder %v610_v61, %v612_v5  ;;  %v618_v12 = vcvt.f32.s32 %v612_v5 }
0x10db   :  { %v614_v8 = vsel %vm613_vm12, %v609_v7, inf }
0x10dc   :  { %615 = vmin.xlane.f32.xlu1 %v614_v8  ;;  %v619_v16 = vshll.u32 %v618_v12, 16 }
0x1165   :  { %v601_v10 = vpop.xlane.xlu0 %600 }
0x1166   :  { %v602_v13 = vcvt.f32.s32 %v601_v10 }
0x1168   :  { %v605_v14 = vadd.s32 %v604_v11, %v602_v13 }
0x1169   :  { %v616_v15 = vpop.xlane.xlu1 %615 }
0x116a   :  { %622 = vst.msk [vmem:[#allocation7] sm:$0xff] %vm621_vm8, %v605_v14  ;;  %v617_v17 = vcvt.f32.s32 %v616_v15  ;;  %vm626_vm13 = vcmp.eq.s32.totalorder %v905_v6, %v605_v14 }
0x116b   :  { %v628_v18 = vsel %vm626_vm13, inf, %v579_v47 }
0x116c   :  { %v620_v19 = vadd.s32 %v619_v16, %v617_v17  ;;  %v630_v20 = vsel %vm50_vm0, %v628_v18, inf }
0x116d   :  { %631 = vmin.xlane.f32.xlu0 %v630_v20 }
0x116e   :  { %623 = vst.msk [vmem:[#allocation7 + $0x8] sm:$0xff] %vm621_vm8, %v620_v19  ;;  %vm627_vm14 = vcmp.eq.s32.totalorder %v905_v6, %v620_v19 }
0x116f   :  { %v629_v21 = vsel %vm627_vm14, inf, %v580_v50 }
0x1170   :  { %v633_v22 = vsel %vm50_vm0, %v629_v21, inf }
0x1171   :  { %634 = vmin.xlane.f32.xlu1 %v633_v22 }
0x11fa   :  { %v632_v28 = vpop.xlane.xlu0 %631 }
0x11fb   :  { %vm636_vm2 = vcmp.eq.f32.partialorder %v628_v18, %v632_v28  ;;  %673 = vst.msk [vmem:[#allocation8] sm:$0xff] %vm670_vm15, %v632_v28 }
0x11fc   :  { %v638_v29 = vsel %vm636_vm2, %v905_v6, 16 }
0x11fd   :  { %v640_v30 = vsel %vm50_vm0, %v638_v29, 2147483647 }
0x11fe   :  { %v635_v31 = vpop.xlane.xlu1 %634  ;;  %v642_v32 = vshra.s32 %v640_v30, 16  ;;  %v641_v36 = vand.u32 65535, %v640_v30 }
0x11ff   :  { %vm637_vm3 = vcmp.eq.f32.partialorder %v629_v21, %v635_v31  ;;  %674 = vst.msk [vmem:[#allocation8 + $0x8] sm:$0xff] %vm670_vm15, %v635_v31 }
0x1200   :  { %v639_v1 = vsel %vm637_vm3, %v905_v6, 16  ;;  %v644_v2 = vcvt.s32.f32 %v642_v32  ;;  %v643_v38 = vcvt.s32.f32 %v641_v36  ;;  %v725_v6 = vpop.f32.mrb[0].mxu0 }
0x1201   :  { %v655_v33 = vsel %vm50_vm0, %v639_v1, 2147483647  ;;  %134 = vst.msk [vmem:[%s1083_s2 + $0x8] sm:$0xff] %vm132_vm1, %v725_v6  ;;  %v123_v44 = vpop.f32.mrb[1].mxu0 }
0x1202   :  { %645 = vmin.xlane.f32.xlu0 %v644_v2  ;;  %v657_v34 = vshra.s32 %v655_v33, 16  ;;  %v656_v39 = vand.u32 65535, %v655_v33  ;;  %133 = vst.msk [vmem:[%s1083_s2] sm:$0xff] %vm132_vm1, %v123_v44 }
0x1204   :  { %v659_v35 = vcvt.s32.f32 %v657_v34  ;;  %v658_v42 = vcvt.s32.f32 %v656_v39 }
0x1206   :  { %660 = vmin.xlane.f32.xlu1 %v659_v35 }
0x128f   :  { %v646_v37 = vpop.xlane.xlu0 %645 }
0x1290   :  { %vm647_vm4 = vcmp.eq.f32.partialorder %v644_v2, %v646_v37 }
0x1291   :  { %v648_v40 = vsel %vm647_vm4, %v643_v38, inf }
0x1292   :  { %649 = vmin.xlane.f32.xlu0 %v648_v40 }
0x1293   :  { %v661_v41 = vpop.xlane.xlu1 %660 }
0x1294   :  { %vm662_vm5 = vcmp.eq.f32.partialorder %v659_v35, %v661_v41 }
0x1295   :  { %v663_v43 = vsel %vm662_vm5, %v658_v42, inf }
0x1296   :  { %664 = vmin.xlane.f32.xlu1 %v663_v43 }
0x1297   :  { %792 = shalt.err (!%p789_p6)
}
0x1298   :  { %s793_s22 = scalar_lea.hbm %s1085_s4, 256 }
0x1299   :  { %p794_p7 = scmp.ne.s32.totalorder %s1085_s4, %s793_s22  ;;  %p797_p8 = scmp.lt.u32.totalorder %s793_s22, %s1085_s4 }
0x129b   :  { %p799_p9 = pnand %p797_p8, %p794_p7 }
0x129d   :  { %802 = shalt.err (!%p799_p9)
}
0x129e   :  { %700 = dma.vmem_to_hbm [thread:$0]  %s695_s16, 256, %s1085_s4, [#allocation9], %s834_s25, %s834_s25, %s835_s26   ;;  %v652_v45 = vcvt.f32.s32 %v646_v37  ;;  %v667_v48 = vcvt.f32.s32 %v661_v41 }
0x129f   :  { %s841_s30 = smov [#allocation7]  }
0x12a0   :  { %v653_v47 = vshll.u32 %v652_v45, 16  ;;  %s682_s5 = sshll.u32 %s841_s30, 4  ;;  %v668_v52 = vshll.u32 %v667_v48, 16  ;;  %s683_s5 = int_to_ptr.vmem [resolvable:$true] %s682_s5 }
0x12a1   :  { %s803_s6 = scalar_lea.vmem %s683_s5, 256  ;;  %p808_p11 = scmp.lt.s32.totalorder %s683_s5, %s683_s5 }
0x12a2   :  { %p804_p10 = scmp.ne.s32.totalorder %s683_s5, %s803_s6  ;;  %p809_p12 = scmp.lt.s32.totalorder %s803_s6, %s803_s6 }
0x12a4   :  { %p810_p13 = por %p809_p12, %p808_p11 }
0x12a6   :  { %p811_p0 = pnand %p810_p13, %p804_p10 }
0x131f   :  { %v650_v46 = vpop.xlane.xlu0 %649 }
0x1320   :  { %v651_v49 = vcvt.f32.s32 %v650_v46 }
0x1322   :  { %v654_v50 = vadd.s32 %v653_v47, %v651_v49 }
0x1323   :  { %v665_v51 = vpop.xlane.xlu1 %664 }
0x1324   :  { %v666_v53 = vcvt.f32.s32 %v665_v51  ;;  %671 = vst.msk [vmem:[#allocation7] sm:$0xff] %vm670_vm15, %v654_v50 }
0x1326   :  { %v669_v54 = vadd.s32 %v668_v52, %v666_v53 }
0x1328   :  { %672 = vst.msk [vmem:[#allocation7 + $0x8] sm:$0xff] %vm670_vm15, %v669_v54 }
0x1329   :  { %814 = shalt.err (!%p811_p0)
}
0x132a   :  { %s815_s8 = scalar_lea.hbm %s1084_s3, 256 }
0x132b   :  { %p816_p1 = scmp.ne.s32.totalorder %s1084_s3, %s815_s8  ;;  %p819_p2 = scmp.lt.u32.totalorder %s815_s8, %s1084_s3 }
0x132d   :  { %p821_p3 = pnand %p819_p2, %p816_p1 }
0x132f   :  { %824 = shalt.err (!%p821_p3)
}
0x1330   :  { %688 = dma.vmem_to_hbm [thread:$0]  %s683_s5, 256, %s1084_s3, [#allocation4], %s834_s25, %s834_s25, %s835_s26  }
0x1331   :  { %829 = dma.done.wait [#allocation4], 256  }
0x1332   :  { %830 = vsyncadd [#allocation4], 4294967040 }
0x1333   :  { %831 = dma.done.wait [#allocation9], 256  }
0x1334   :  { %832 = vsyncadd [#allocation9], 4294967040 }
0x1335   :  { %709 = vsyncpa [#allocation3], 1 }
0x1336   :  { %710 = vsyncpa [#allocation6], 1 }
0x1337   :  { %711 = vsyncpa [#allocation4], 1 }
0x1338   :  { %712 = vsyncpa [#allocation9], 1 }

</bundles_post_ra>
